<compile_context>
chip_gen: v6e
topology: v6e:2x2x1
jax: 0.10.0
libtpu: 0.0.40
codegen_flags: <defaults>
</compile_context>

<pallas_src>
import numpy as np
import jax
import jax.numpy as jnp
from jax.experimental import pallas as pl
from jax.experimental.pallas import tpu as pltpu

# ----------------------- config (RoIHeads.__init__) -----------------------
NUM_CLASSES = 5                    # includes background class 0
POOLED = 4                         # box_roi_pool output resolution
SAMPLING_RATIO = 2
HIDDEN = 32                        # TwoMLPHead representation size
BBOX_REG_WEIGHTS = (10.0, 10.0, 5.0, 5.0)
SCORE_THRESH = 0.05
NMS_THRESH = 0.5
DETECTIONS_PER_IMG = 10
BBOX_XFORM_CLIP = float(np.log(1000.0 / 16.0))

LANE = 128
OUT_W = NUM_CLASSES * 5                                  # 5 logits + 20 box deltas = 25
H_PAD = LANE                                             # hidden padded to 128 (see header note)
OUT_PAD = LANE                                           # single 128-lane output slab
assert 2 * OUT_W <= OUT_PAD, "scores|boxes|logits|boxreg must fit in one 128-lane slab"
assert H_PAD == OUT_PAD, "bias packing assumes equal padded hidden/output widths"


def _round_up(x, m):
    return ((x + m - 1) // m) * m


def _choose_tiling(n):
    """Row tile and padded row count.

    Biggest tile up to the per-generation cap, padding clamped (tiny N -> single exact tile),
    and >=2 grid steps on v7x so both TensorCores get rows via the "parallel" axis.
    """
    try:
        kind = jax.devices()[0].device_kind.lower()
    except Exception:
        kind = ""
    cap = 1024 if ("v6" in kind or "v7" in kind) else 512
    n16 = _round_up(max(n, 16), 16)          # 16-row granularity (bf16 sublane packing)
    steps = -(-n16 // cap)                   # ceil
    if "v7" in kind and n16 > 16:
        steps = max(steps, 2)                # 2 TensorCores per chip on v7x
    tm = _round_up(-(-n16 // steps), 16)
    return tm, steps * tm


# ----------------------- fused Pallas kernel -----------------------
def _roi_head_fused_kernel(x_ref, w6_ref, w7_ref, wh_ref, bias_ref, ph_ref, out_ref):
    f32 = jnp.float32

    # ---- TwoMLPHead (fc6+ReLU, fc7+ReLU) + fused box_predictor: 3 bf16 MXU matmuls ----
    b6 = bias_ref[0:1, :]
    b7 = bias_ref[1:2, :]
    bh = bias_ref[2:3, :]
    h = jnp.dot(x_ref[...], w6_ref[...], preferred_element_type=f32) + b6
    h = jnp.maximum(h, 0.0).astype(jnp.bfloat16)
    h = jnp.dot(h, w7_ref[...], preferred_element_type=f32) + b7
    h = jnp.maximum(h, 0.0).astype(jnp.bfloat16)
    t = jnp.dot(h, wh_ref[...], preferred_element_type=f32) + bh      # [TM, 128]
    # t lanes: 0:5 class logits, 5:25 box regression [dx,dy,dw,dh] per class, rest 0.

    # ---- trace-time lane structure (full-width, no per-class loop) ----
    lane = jax.lax.broadcasted_iota(jnp.int32, (1, LANE), 1)
    kk = jnp.remainder(lane - NUM_CLASSES, 4)             # position within a 4-lane class group
    logit_lane = lane < NUM_CLASSES                        # lanes 0:5
    box_lane = jnp.logical_and(lane >= NUM_CLASSES, lane < OUT_W)      # lanes 5:25
    raw_lane = jnp.logical_and(lane >= OUT_W, lane < 2 * OUT_W)        # lanes 25:50
    hi_lane = kk >= 2                                      # x2 / y2 output lanes
    x_lane = (kk % 2) == 0                                 # x1 / x2 output lanes
    inv_w = jnp.where(kk == 0, 1.0 / BBOX_REG_WEIGHTS[0],
            jnp.where(kk == 1, 1.0 / BBOX_REG_WEIGHTS[1],
            jnp.where(kk == 2, 1.0 / BBOX_REG_WEIGHTS[2],
                               1.0 / BBOX_REG_WEIGHTS[3]))).astype(f32)
    half_sign = jnp.where(hi_lane, 0.5, -0.5).astype(f32)

    # ---- softmax over the class-logit lanes (masked full-width exp, exact division) ----
    tl = jnp.where(logit_lane, t, -jnp.inf)
    m = jnp.max(tl, axis=-1, keepdims=True)
    e = jnp.exp(tl - m)                                    # exactly 0 outside lanes 0:5
    scores = e / jnp.sum(e, axis=-1, keepdims=True)

    # ---- proposal geometry (packed [x1,y1,x2,y2,imh,imw,0,0]); lane-broadcast once ----
    px1 = ph_ref[:, 0:1]
    py1 = ph_ref[:, 1:2]
    px2 = ph_ref[:, 2:3]
    py2 = ph_ref[:, 3:4]
    imh = ph_ref[:, 4:5]
    imw = ph_ref[:, 5:6]
    pw0 = px2 - px1
    ph0 = py2 - py1
    cx = px1 + 0.5 * pw0
    cy = py1 + 0.5 * ph0
    dim = jnp.where(x_lane, pw0, ph0)                      # [TM, 128]
    ctr = jnp.where(x_lane, cx, cy)
    lim = jnp.where(x_lane, imw, imh)

    # ---- vectorized BoxCoder.decode (weights 10,10,5,5, dw/dh clamp) + clip_boxes_to_image ----
    delta = t * inv_w
    d_p2 = pltpu.roll(delta, shift=2, axis=1)              # delta[lane-2]: dx/dy for x2/y2 lanes
    d_m2 = pltpu.roll(delta, shift=LANE - 2, axis=1)       # delta[lane+2]: dw/dh for x1/y1 lanes
    pos = jnp.where(hi_lane, d_p2, delta)                  # center delta for this output lane
    size = jnp.minimum(jnp.where(hi_lane, delta, d_m2), BBOX_XFORM_CLIP)
    boxes = ctr + pos * dim + half_sign * jnp.exp(size) * dim
    boxes = jnp.clip(boxes, 0.0, lim)

    # ---- single 128-lane store: [scores | boxes | logits | box_regression | 0] ----
    t_shift = pltpu.roll(t, shift=OUT_W, axis=1)           # logits -> 25:30, boxreg -> 30:50
    out = jnp.where(box_lane, boxes, scores)
    out = jnp.where(raw_lane, t_shift, out)
    out_ref[...] = out


def prepare_packed_params(params):
    """Pad matmul N dims to 128, fuse cls/bbox heads into one weight, cast to bf16.

    Returns (w6 [D,128] bf16, w7 [128,128] bf16, w_head [128,128] bf16 = [cls | bbox | 0],
             bias [8,128] f32 with rows 0/1/2 = fc6 / fc7 / head biases).
    The contraction dim of the 1st matmul is the natural D (no activation padding in XLA).
    """
    w6, b6, w7, b7, wc, bc, wb, bb = params
    d, hdim = w6.shape
    w6p = jnp.zeros((d, H_PAD), jnp.float32).at[:, :hdim].set(w6)
    w7p = jnp.zeros((H_PAD, H_PAD), jnp.float32).at[:hdim, :hdim].set(w7)
    whp = jnp.zeros((H_PAD, OUT_PAD), jnp.float32)
    whp = whp.at[:hdim, :NUM_CLASSES].set(wc)
    whp = whp.at[:hdim, NUM_CLASSES:OUT_W].set(wb)
    bias = jnp.zeros((8, OUT_PAD), jnp.float32)
    bias = bias.at[0, :hdim].set(b6)
    bias = bias.at[1, :hdim].set(b7)
    bias = bias.at[2, :NUM_CLASSES].set(bc)
    bias = bias.at[2, NUM_CLASSES:OUT_W].set(bb)
    return (w6p.astype(jnp.bfloat16), w7p.astype(jnp.bfloat16),
            whp.astype(jnp.bfloat16), bias)


def fused_box_head_postprocess(x, prop_hw, packed):
    """x: [N, D] bf16 flattened roi features; prop_hw: [N, 8] packed [xyxy, imh, imw, 0, 0].

    Returns (class_logits [N,NC], box_regression [N,4*NC], scores [N,NC], boxes [N,NC,4]).
    """
    w6p, w7p, whp, bias = packed
    n, d = x.shape
    tm, n_pad = _choose_tiling(n)
    xp = x if n_pad == n else jnp.pad(x, ((0, n_pad - n), (0, 0)))
    php = prop_hw if n_pad == n else jnp.pad(prop_hw, ((0, n_pad - n), (0, 0)))

    flops = 2 * n_pad * (d * H_PAD + H_PAD * H_PAD + H_PAD * OUT_PAD)
    io_bytes = (xp.size * 2 + php.size * 4 + n_pad * OUT_PAD * 4
                + w6p.size * 2 + w7p.size * 2 + whp.size * 2 + bias.size * 4)

    out = pl.pallas_call(
        _roi_head_fused_kernel,
        out_shape=jax.ShapeDtypeStruct((n_pad, OUT_PAD), jnp.float32),
        grid=(n_pad // tm,),
        in_specs=[
            pl.BlockSpec((tm, d), lambda i: (i, 0)),           # roi features, row-tiled (bf16)
            pl.BlockSpec((d, H_PAD), lambda i: (0, 0)),        # fc6 weight (resident)
            pl.BlockSpec((H_PAD, H_PAD), lambda i: (0, 0)),    # fc7 weight (resident)
            pl.BlockSpec((H_PAD, OUT_PAD), lambda i: (0, 0)),  # fused [cls|bbox] weight
            pl.BlockSpec((8, OUT_PAD), lambda i: (0, 0)),      # packed biases
            pl.BlockSpec((tm, 8), lambda i: (i, 0)),           # proposals + (imh, imw)
        ],
        out_specs=pl.BlockSpec((tm, OUT_PAD), lambda i: (i, 0)),
        compiler_params=pltpu.CompilerParams(
            dimension_semantics=("parallel",),
            vmem_limit_bytes=32 * 1024 * 1024),
        cost_estimate=pl.CostEstimate(flops=int(flops),
                                      transcendentals=int(2 * n_pad * OUT_PAD),
                                      bytes_accessed=int(io_bytes)),
    )(xp, w6p, w7p, whp, bias, php)

    scores = out[:n, :NUM_CLASSES]
    boxes = out[:n, NUM_CLASSES:OUT_W].reshape(n, NUM_CLASSES, 4)
    class_logits = out[:n, OUT_W:OUT_W + NUM_CLASSES]
    box_regression = out[:n, OUT_W + NUM_CLASSES:2 * OUT_W]
    return class_logits, box_regression, scores, boxes


# ----------------------- RoIAlign as interpolation matmuls (MXU, no XLA gather) -----------
def _bilinear_weights(coords, size):
    c = jnp.clip(coords, 0.0, size - 1.0)
    c0 = jnp.floor(c)
    c1 = jnp.minimum(c0 + 1.0, size - 1.0)
    frac = c - c0
    grid = jnp.arange(size, dtype=jnp.float32)[None, :]
    return ((grid == c0[:, None]).astype(jnp.float32) * (1.0 - frac[:, None]) +
            (grid == c1[:, None]).astype(jnp.float32) * frac[:, None])


def roi_align(feat, boxes, spatial_scale, pooled, sampling_ratio):
    """feat: [C, H, W]; boxes: [K, 4] xyxy in image coords -> [K, C, pooled, pooled] bf16.

    Bilinear sampling expressed as two interpolation matmuls per ROI (MXU-friendly); emits
    bf16 so the head kernel consumes it without another cast/pad pass.
    # TODO(synk): torchvision RoIAlign zeroes contributions for samples outside [-1, H];
    # here coordinates are clipped to [0, H-1], so border boxes can differ slightly.
    # TODO(synk): at production sizes (C~256, pooled=7, ~1000 rois) this should be pipelined
    # tile-by-tile into the Pallas head kernel instead of materializing pooled features.
    """
    C, H, W = feat.shape

    def one_box(box):
        bx1, by1, bx2, by2 = box * spatial_scale
        roi_w = jnp.maximum(bx2 - bx1, 1.0)
        roi_h = jnp.maximum(by2 - by1, 1.0)
        bin_w = roi_w / pooled
        bin_h = roi_h / pooled
        pidx = jnp.arange(pooled, dtype=jnp.float32)
        sidx = jnp.arange(sampling_ratio, dtype=jnp.float32)
        ys = (by1 + pidx[:, None] * bin_h +
              (sidx[None, :] + 0.5) * bin_h / sampling_ratio).reshape(-1)
        xs = (bx1 + pidx[:, None] * bin_w +
              (sidx[None, :] + 0.5) * bin_w / sampling_ratio).reshape(-1)
        wy = _bilinear_weights(ys, H)                          # [S, H]
        wx = _bilinear_weights(xs, W)                          # [S, W]
        smp = jnp.einsum('sh,chw,tw->cst', wy, feat, wx)       # [C, S, S]
        smp = smp.reshape(C, pooled, sampling_ratio, pooled, sampling_ratio)
        return smp.mean(axis=(2, 4)).astype(jnp.bfloat16)

    return jax.vmap(one_box)(boxes)


# ----------------------- glue: dynamic-shape postprocess (numpy, host side) ----------------
# TODO(synk): score-threshold / remove_small / batched NMS / top-k have data-dependent output
# shapes; a fixed-shape on-device NMS would remove this device->host sync.
def _remove_small_boxes_np(boxes, min_size):
    ws = boxes[:, 2] - boxes[:, 0]
    hs = boxes[:, 3] - boxes[:, 1]
    return np.where((ws >= min_size) & (hs >= min_size))[0]


def _nms_np(boxes, scores, thresh):
    order = scores.argsort()[::-1]
    keep = []
    while order.size > 0:
        i = int(order[0])
        keep.append(i)
        if order.size == 1:
            break
        rest = order[1:]
        xx1 = np.maximum(boxes[i, 0], boxes[rest, 0])
        yy1 = np.maximum(boxes[i, 1], boxes[rest, 1])
        xx2 = np.minimum(boxes[i, 2], boxes[rest, 2])
        yy2 = np.minimum(boxes[i, 3], boxes[rest, 3])
        inter = np.maximum(0.0, xx2 - xx1) * np.maximum(0.0, yy2 - yy1)
        area_i = (boxes[i, 2] - boxes[i, 0]) * (boxes[i, 3] - boxes[i, 1])
        areas = (boxes[rest, 2] - boxes[rest, 0]) * (boxes[rest, 3] - boxes[rest, 1])
        iou = inter / (area_i + areas - inter + 1e-12)
        order = rest[iou <= thresh]
    return np.asarray(keep, dtype=np.int64)


def _batched_nms_np(boxes, scores, labels, thresh):
    if boxes.shape[0] == 0:
        return np.zeros((0,), dtype=np.int64)
    max_coord = boxes.max()
    offsets = labels.astype(boxes.dtype) * (max_coord + 1.0)
    return _nms_np(boxes + offsets[:, None], scores, thresh)


# ----------------------- RoIHeads.forward (inference path) -----------------------
def roi_heads_forward(features, proposals, image_shapes, packed_params, spatial_scale,
                      return_aux=False):
    # TODO(synk): training branch (select_training_samples: IoU matcher, balanced pos/neg
    # sampler, fastrcnn_loss) needs data-dependent boolean indexing / random subsampling
    # with dynamic shapes — only the eval path is implemented.
    boxes_per_image = [int(p.shape[0]) for p in proposals]

    # box_roi_pool (matmul-form bilinear RoIAlign; vmapped over images when shapes match)
    if len({tuple(p.shape) for p in proposals}) == 1:
        props = jnp.stack(proposals)                                  # [B, K, 4]
        pooled = jax.vmap(
            lambda f, p: roi_align(f, p, spatial_scale, POOLED, SAMPLING_RATIO)
        )(features, props)                                            # [B, K, C, P, P] bf16
        x = pooled.reshape(pooled.shape[0] * pooled.shape[1], -1)     # TwoMLPHead flatten
    else:
        pooled = [roi_align(features[i], proposals[i], spatial_scale, POOLED, SAMPLING_RATIO)
                  for i in range(len(proposals))]
        x = jnp.concatenate([p.reshape(p.shape[0], -1) for p in pooled], axis=0)

    # pack proposals + per-image (h, w) into one (N, 8) kernel input
    concat_props = jnp.concatenate(proposals, axis=0)
    hw = jnp.concatenate(
        [jnp.tile(jnp.array([[float(h), float(w)]], jnp.float32), (k, 1))
         for (h, w), k in zip(image_shapes, boxes_per_image)], axis=0)
    prop_hw = jnp.concatenate(
        [concat_props, hw, jnp.zeros((concat_props.shape[0], 2), jnp.float32)], axis=1)

    # fused box_head + box_predictor + softmax + decode + clip (single Pallas kernel)
    class_logits, box_regression, scores, boxes = fused_box_head_postprocess(
        x, prop_hw, packed_params)

    # per-image filtering / NMS / top-k (dynamic shapes -> host numpy)
    result = []
    off = 0
    for k in boxes_per_image:
        b = np.asarray(boxes[off:off + k])          # [k, NC, 4]
        s = np.asarray(scores[off:off + k])         # [k, NC]
        off += k
        lbl = np.broadcast_to(np.arange(NUM_CLASSES)[None, :], s.shape)
        b = b[:, 1:].reshape(-1, 4)                 # drop background column
        s = s[:, 1:].reshape(-1)
        l = lbl[:, 1:].reshape(-1)
        inds = np.where(s > SCORE_THRESH)[0]
        b, s, l = b[inds], s[inds], l[inds]
        keep = _remove_small_boxes_np(b, 1.0)
        b, s, l = b[keep], s[keep], l[keep]
        keep = _batched_nms_np(b, s, l, NMS_THRESH)[:DETECTIONS_PER_IMG]
        b, s, l = b[keep], s[keep], l[keep]
        result.append({'boxes': jnp.asarray(b, jnp.float32),
                       'labels': jnp.asarray(l, jnp.int32),   # torch uses int64; JAX x64 off
                       'scores': jnp.asarray(s, jnp.float32)})
    losses = {}
    if return_aux:
        aux = {'class_logits': class_logits, 'box_regression': box_regression,
               'scores': scores, 'boxes': boxes, 'x': x,
               'proposals_cat': concat_props, 'hw': hw}
        return result, losses, aux
    return result, losses


# ----------------------- deterministic parameter init -----------------------
def init_params(key, in_dim, hidden, num_classes):
    ks = jax.random.split(key, 4)
    w6 = jax.random.normal(ks[0], (in_dim, hidden), jnp.float32) * 0.05
    b6 = jnp.full((hidden,), 0.01, jnp.float32)
    w7 = jax.random.normal(ks[1], (hidden, hidden), jnp.float32) * 0.05
    b7 = jnp.full((hidden,), 0.01, jnp.float32)
    wc = jax.random.normal(ks[2], (hidden, num_classes), jnp.float32) * 0.05
    bc = jnp.zeros((num_classes,), jnp.float32)
    wb = jax.random.normal(ks[3], (hidden, num_classes * 4), jnp.float32) * 0.02
    bb = jnp.zeros((num_classes * 4,), jnp.float32)
    return (w6, b6, w7, b7, wc, bc, wb, bb)


# ----------------------- pure-JAX reference (mirrors the kernel's bf16 MXU math) ----------
def reference_head_and_post(x, params, proposals, hw):
    w6, b6, w7, b7, wc, bc, wb, bb = params
    xb = x.astype(jnp.bfloat16)
    h = jnp.maximum(jnp.dot(xb, w6.astype(jnp.bfloat16),
                            preferred_element_type=jnp.float32) + b6, 0.0)
    hb = h.astype(jnp.bfloat16)
    h = jnp.maximum(jnp.dot(hb, w7.astype(jnp.bfloat16),
                            preferred_element_type=jnp.float32) + b7, 0.0)
    hb = h.astype(jnp.bfloat16)
    logits = jnp.dot(hb, wc.astype(jnp.bfloat16), preferred_element_type=jnp.float32) + bc
    boxreg = jnp.dot(hb, wb.astype(jnp.bfloat16), preferred_element_type=jnp.float32) + bb
    scores = jax.nn.softmax(logits, axis=-1)
    n = logits.shape[0]
    reg = boxreg.reshape(n, NUM_CLASSES, 4)
    wgt = jnp.array(BBOX_REG_WEIGHTS, jnp.float32)
    px1, py1, px2, py2 = proposals[:, 0], proposals[:, 1], proposals[:, 2], proposals[:, 3]
    w = px2 - px1
    ht = py2 - py1
    cx = px1 + 0.5 * w
    cy = py1 + 0.5 * ht
    dx = reg[..., 0] / wgt[0]
    dy = reg[..., 1] / wgt[1]
    dw = jnp.minimum(reg[..., 2] / wgt[2], BBOX_XFORM_CLIP)
    dh = jnp.minimum(reg[..., 3] / wgt[3], BBOX_XFORM_CLIP)
    pcx = dx * w[:, None] + cx[:, None]
    pcy = dy * ht[:, None] + cy[:, None]
    pw = jnp.exp(dw) * w[:, None]
    ph = jnp.exp(dh) * ht[:, None]
    x1 = pcx - 0.5 * pw
    y1 = pcy - 0.5 * ph
    x2 = pcx + 0.5 * pw
    y2 = pcy + 0.5 * ph
    imh, imw = hw[:, 0:1], hw[:, 1:2]
    boxes = jnp.stack([jnp.clip(x1, 0.0, imw), jnp.clip(y1, 0.0, imh),
                       jnp.clip(x2, 0.0, imw), jnp.clip(y2, 0.0, imh)], axis=-1)
    return logits, scores, boxes


# ----------------------- main -----------------------
if __name__ == "__main__":
    key = jax.random.PRNGKey(0)
    k_feat, k_prop, k_params = jax.random.split(key, 3)

    B, C, Hf, Wf = 2, 4, 16, 16
    features = jax.random.normal(k_feat, (B, C, Hf, Wf), jnp.float32)   # NCHW
    image_shapes = [(32, 32), (32, 32)]
    spatial_scale = Hf / float(image_shapes[0][0])                      # 0.5

    K = 8
    kp = jax.random.split(k_prop, B)
    proposals = []
    for i in range(B):
        k1, k2 = jax.random.split(kp[i])
        xy = jax.random.uniform(k1, (K, 2), minval=0.0, maxval=20.0)
        wh = jax.random.uniform(k2, (K, 2), minval=4.0, maxval=12.0)
        proposals.append(jnp.concatenate([xy, jnp.minimum(xy + wh, 31.0)], axis=-1)
                         .astype(jnp.float32))

    params = init_params(k_params, C * POOLED * POOLED, HIDDEN, NUM_CLASSES)
    packed_params = prepare_packed_params(params)   # pad/fuse/cast once, reused per call

    result, losses, aux = roi_heads_forward(features, proposals, image_shapes,
                                            packed_params, spatial_scale, return_aux=True)
    for r in result:
        jax.block_until_ready(r['boxes'])
        jax.block_until_ready(r['scores'])
    jax.block_until_ready(aux['scores'])

    # correctness check vs pure-JAX reference (pre-NMS tensors)
    ref_logits, ref_scores, ref_boxes = reference_head_and_post(
        aux['x'], params, aux['proposals_cat'], aux['hw'])
    np.testing.assert_allclose(np.asarray(aux['class_logits']), np.asarray(ref_logits),
                               rtol=2e-2, atol=2e-2)
    np.testing.assert_allclose(np.asarray(aux['scores']), np.asarray(ref_scores),
                               rtol=2e-2, atol=2e-2)
    np.testing.assert_allclose(np.asarray(aux['boxes']), np.asarray(ref_boxes),
                               rtol=2e-2, atol=2e-2)

    print("KERNEL_OK")
</pallas_src>

<mosaic_0001>
module attributes {stable_mosaic.version = 11 : i64} {
  func.func @_roi_head_fused_kernel(%arg0: i32, %arg1: memref<16x64xbf16, #tpu.memory_space<vmem>>, %arg2: memref<64x128xbf16, #tpu.memory_space<vmem>>, %arg3: memref<128x128xbf16, #tpu.memory_space<vmem>>, %arg4: memref<128x128xbf16, #tpu.memory_space<vmem>>, %arg5: memref<8x128xf32, #tpu.memory_space<vmem>>, %arg6: memref<16x8xf32, #tpu.memory_space<vmem>>, %arg7: memref<16x128xf32, #tpu.memory_space<vmem>>) attributes {dimension_semantics = [#tpu.dimension_semantics<parallel>], iteration_bounds = array<i64: 1>, scalar_prefetch = 0 : i64, scratch_operands = 0 : i64, tpu.core_type = #tpu.core_type<tc>, window_params = [{transform_indices = @transform_0, window_bounds = array<i64: 16, 64>}, {pipeline_mode = #tpu.pipeline_mode<synchronous>, transform_indices = @transform_1, window_bounds = array<i64: 64, 128>}, {pipeline_mode = #tpu.pipeline_mode<synchronous>, transform_indices = @transform_2, window_bounds = array<i64: 128, 128>}, {pipeline_mode = #tpu.pipeline_mode<synchronous>, transform_indices = @transform_3, window_bounds = array<i64: 128, 128>}, {pipeline_mode = #tpu.pipeline_mode<synchronous>, transform_indices = @transform_4, window_bounds = array<i64: 8, 128>}, {transform_indices = @transform_5, window_bounds = array<i64: 16, 8>}, {transform_indices = @transform_6, window_bounds = array<i64: 16, 128>}]} {
    %c0 = arith.constant 0 : index
    %c0_0 = arith.constant 0 : index
    %0 = vector.load %arg5[%c0, %c0_0] : memref<8x128xf32, #tpu.memory_space<vmem>>, vector<1x128xf32>
    %c1 = arith.constant 1 : index
    %c0_1 = arith.constant 0 : index
    %1 = vector.load %arg5[%c1, %c0_1] : memref<8x128xf32, #tpu.memory_space<vmem>>, vector<1x128xf32>
    %c2 = arith.constant 2 : index
    %c0_2 = arith.constant 0 : index
    %2 = vector.load %arg5[%c2, %c0_2] : memref<8x128xf32, #tpu.memory_space<vmem>>, vector<1x128xf32>
    %c0_3 = arith.constant 0 : index
    %c0_4 = arith.constant 0 : index
    %3 = vector.load %arg1[%c0_3, %c0_4] : memref<16x64xbf16, #tpu.memory_space<vmem>>, vector<16x64xbf16>
    %c0_5 = arith.constant 0 : index
    %c0_6 = arith.constant 0 : index
    %4 = vector.load %arg2[%c0_5, %c0_6] : memref<64x128xbf16, #tpu.memory_space<vmem>>, vector<64x128xbf16>
    %cst = arith.constant dense<0.000000e+00> : vector<16x128xf32>
    %5 = tpu.matmul %3, %4, %cst {dimension_numbers = #tpu.dot_dimension_numbers<[1], [0], [0], [1], [0, 0, 1, 1], [], []>} : vector<16x64xbf16>, vector<64x128xbf16>, vector<16x128xf32> -> vector<16x128xf32>
    %6 = vector.broadcast %0 : vector<1x128xf32> to vector<16x128xf32>
    %7 = arith.addf %5, %6 : vector<16x128xf32>
    %cst_7 = arith.constant 0.000000e+00 : f32
    %8 = vector.broadcast %cst_7 : f32 to vector<16x128xf32>
    %9 = arith.maximumf %7, %8 : vector<16x128xf32>
    %10 = arith.truncf %9 : vector<16x128xf32> to vector<16x128xbf16>
    %c0_8 = arith.constant 0 : index
    %c0_9 = arith.constant 0 : index
    %11 = vector.load %arg3[%c0_8, %c0_9] : memref<128x128xbf16, #tpu.memory_space<vmem>>, vector<128x128xbf16>
    %cst_10 = arith.constant dense<0.000000e+00> : vector<16x128xf32>
    %12 = tpu.matmul %10, %11, %cst_10 {dimension_numbers = #tpu.dot_dimension_numbers<[1], [0], [0], [1], [0, 0, 1, 1], [], []>} : vector<16x128xbf16>, vector<128x128xbf16>, vector<16x128xf32> -> vector<16x128xf32>
    %13 = vector.broadcast %1 : vector<1x128xf32> to vector<16x128xf32>
    %14 = arith.addf %12, %13 : vector<16x128xf32>
    %cst_11 = arith.constant 0.000000e+00 : f32
    %15 = vector.broadcast %cst_11 : f32 to vector<16x128xf32>
    %16 = arith.maximumf %14, %15 : vector<16x128xf32>
    %17 = arith.truncf %16 : vector<16x128xf32> to vector<16x128xbf16>
    %c0_12 = arith.constant 0 : index
    %c0_13 = arith.constant 0 : index
    %18 = vector.load %arg4[%c0_12, %c0_13] : memref<128x128xbf16, #tpu.memory_space<vmem>>, vector<128x128xbf16>
    %cst_14 = arith.constant dense<0.000000e+00> : vector<16x128xf32>
    %19 = tpu.matmul %17, %18, %cst_14 {dimension_numbers = #tpu.dot_dimension_numbers<[1], [0], [0], [1], [0, 0, 1, 1], [], []>} : vector<16x128xbf16>, vector<128x128xbf16>, vector<16x128xf32> -> vector<16x128xf32>
    %20 = vector.broadcast %2 : vector<1x128xf32> to vector<16x128xf32>
    %21 = arith.addf %19, %20 : vector<16x128xf32>
    %22 = tpu.iota {dimensions = array<i32: 1>} : vector<1x128xi32>
    %c5_i32 = arith.constant 5 : i32
    %23 = vector.broadcast %c5_i32 : i32 to vector<1x128xi32>
    %24 = arith.subi %22, %23 : vector<1x128xi32>
    %c4_i32 = arith.constant 4 : i32
    %c0_i32 = arith.constant 0 : i32
    %25 = arith.cmpi eq, %c4_i32, %c0_i32 : i32
    %c1_i32 = arith.constant 1 : i32
    %26 = arith.select %25, %c1_i32, %c4_i32 : i32
    %27 = vector.broadcast %26 : i32 to vector<1x128xi32>
    %28 = arith.remsi %24, %27 : vector<1x128xi32>
    %c0_i32_15 = arith.constant 0 : i32
    %29 = vector.broadcast %c0_i32_15 : i32 to vector<1x128xi32>
    %30 = arith.cmpi ne, %28, %29 : vector<1x128xi32>
    %c0_i32_16 = arith.constant 0 : i32
    %31 = vector.broadcast %c0_i32_16 : i32 to vector<1x128xi32>
    %32 = arith.cmpi slt, %28, %31 : vector<1x128xi32>
    %c0_i32_17 = arith.constant 0 : i32
    %33 = arith.cmpi slt, %26, %c0_i32_17 : i32
    %34 = vector.broadcast %33 : i1 to vector<1x128xi1>
    %35 = vector.broadcast %34 : vector<1x128xi1> to vector<1x128xi1>
    %36 = arith.xori %32, %35 : vector<1x128xi1>
    %37 = arith.andi %36, %30 : vector<1x128xi1>
    %38 = vector.broadcast %26 : i32 to vector<1x128xi32>
    %39 = arith.addi %28, %38 : vector<1x128xi32>
    %40 = arith.select %37, %39, %28 : vector<1x128xi1>, vector<1x128xi32>
    %c5_i32_18 = arith.constant 5 : i32
    %41 = vector.broadcast %c5_i32_18 : i32 to vector<1x128xi32>
    %42 = arith.cmpi slt, %22, %41 : vector<1x128xi32>
    %c5_i32_19 = arith.constant 5 : i32
    %43 = vector.broadcast %c5_i32_19 : i32 to vector<1x128xi32>
    %44 = arith.cmpi sge, %22, %43 : vector<1x128xi32>
    %c25_i32 = arith.constant 25 : i32
    %45 = vector.broadcast %c25_i32 : i32 to vector<1x128xi32>
    %46 = arith.cmpi slt, %22, %45 : vector<1x128xi32>
    %47 = arith.andi %44, %46 : vector<1x128xi1>
    %c25_i32_20 = arith.constant 25 : i32
    %48 = vector.broadcast %c25_i32_20 : i32 to vector<1x128xi32>
    %49 = arith.cmpi sge, %22, %48 : vector<1x128xi32>
    %c50_i32 = arith.constant 50 : i32
    %50 = vector.broadcast %c50_i32 : i32 to vector<1x128xi32>
    %51 = arith.cmpi slt, %22, %50 : vector<1x128xi32>
    %52 = arith.andi %49, %51 : vector<1x128xi1>
    %c2_i32 = arith.constant 2 : i32
    %53 = vector.broadcast %c2_i32 : i32 to vector<1x128xi32>
    %54 = arith.cmpi sge, %40, %53 : vector<1x128xi32>
    %c2_i32_21 = arith.constant 2 : i32
    %c0_i32_22 = arith.constant 0 : i32
    %55 = arith.cmpi eq, %c2_i32_21, %c0_i32_22 : i32
    %c1_i32_23 = arith.constant 1 : i32
    %56 = arith.select %55, %c1_i32_23, %c2_i32_21 : i32
    %57 = vector.broadcast %56 : i32 to vector<1x128xi32>
    %58 = arith.remsi %40, %57 : vector<1x128xi32>
    %c0_i32_24 = arith.constant 0 : i32
    %59 = vector.broadcast %c0_i32_24 : i32 to vector<1x128xi32>
    %60 = arith.cmpi ne, %58, %59 : vector<1x128xi32>
    %c0_i32_25 = arith.constant 0 : i32
    %61 = vector.broadcast %c0_i32_25 : i32 to vector<1x128xi32>
    %62 = arith.cmpi slt, %58, %61 : vector<1x128xi32>
    %c0_i32_26 = arith.constant 0 : i32
    %63 = arith.cmpi slt, %56, %c0_i32_26 : i32
    %64 = vector.broadcast %63 : i1 to vector<1x128xi1>
    %65 = vector.broadcast %64 : vector<1x128xi1> to vector<1x128xi1>
    %66 = arith.xori %62, %65 : vector<1x128xi1>
    %67 = arith.andi %66, %60 : vector<1x128xi1>
    %68 = vector.broadcast %56 : i32 to vector<1x128xi32>
    %69 = arith.addi %58, %68 : vector<1x128xi32>
    %70 = arith.select %67, %69, %58 : vector<1x128xi1>, vector<1x128xi32>
    %c0_i32_27 = arith.constant 0 : i32
    %71 = vector.broadcast %c0_i32_27 : i32 to vector<1x128xi32>
    %72 = arith.cmpi eq, %70, %71 : vector<1x128xi32>
    %c0_i32_28 = arith.constant 0 : i32
    %73 = vector.broadcast %c0_i32_28 : i32 to vector<1x128xi32>
    %74 = arith.cmpi eq, %40, %73 : vector<1x128xi32>
    %c1_i32_29 = arith.constant 1 : i32
    %75 = vector.broadcast %c1_i32_29 : i32 to vector<1x128xi32>
    %76 = arith.cmpi eq, %40, %75 : vector<1x128xi32>
    %c2_i32_30 = arith.constant 2 : i32
    %77 = vector.broadcast %c2_i32_30 : i32 to vector<1x128xi32>
    %78 = arith.cmpi eq, %40, %77 : vector<1x128xi32>
    %cst_31 = arith.constant 2.000000e-01 : f32
    %cst_32 = arith.constant 2.000000e-01 : f32
    %79 = vector.broadcast %cst_31 : f32 to vector<1x128xf32>
    %80 = vector.broadcast %cst_32 : f32 to vector<1x128xf32>
    %81 = arith.select %78, %79, %80 : vector<1x128xi1>, vector<1x128xf32>
    %cst_33 = arith.constant 1.000000e-01 : f32
    %82 = vector.broadcast %cst_33 : f32 to vector<1x128xf32>
    %83 = arith.select %76, %82, %81 : vector<1x128xi1>, vector<1x128xf32>
    %cst_34 = arith.constant 1.000000e-01 : f32
    %84 = vector.broadcast %cst_34 : f32 to vector<1x128xf32>
    %85 = arith.select %74, %84, %83 : vector<1x128xi1>, vector<1x128xf32>
    %cst_35 = arith.constant 5.000000e-01 : f32
    %cst_36 = arith.constant -5.000000e-01 : f32
    %86 = vector.broadcast %cst_35 : f32 to vector<1x128xf32>
    %87 = vector.broadcast %cst_36 : f32 to vector<1x128xf32>
    %88 = arith.select %54, %86, %87 : vector<1x128xi1>, vector<1x128xf32>
    %cst_37 = arith.constant 0xFF800000 : f32
    %89 = vector.shape_cast %42 : vector<1x128xi1> to vector<1x128xi1>
    %90 = vector.broadcast %89 : vector<1x128xi1> to vector<16x128xi1>
    %91 = vector.broadcast %cst_37 : f32 to vector<16x128xf32>
    %92 = arith.select %90, %21, %91 : vector<16x128xi1>, vector<16x128xf32>
    %cst_38 = arith.constant dense<0xFF800000> : vector<16xf32>
    %93 = vector.multi_reduction <maximumf>, %92, %cst_38 [1] : vector<16x128xf32> to vector<16xf32>
    %94 = vector.shape_cast %93 : vector<16xf32> to vector<16x1xf32>
    %95 = vector.broadcast %94 : vector<16x1xf32> to vector<16x128xf32>
    %96 = arith.subf %92, %95 : vector<16x128xf32>
    %97 = math.exp %96 : vector<16x128xf32>
    %cst_39 = arith.constant dense<0.000000e+00> : vector<16xf32>
    %98 = vector.multi_reduction <add>, %97, %cst_39 [1] : vector<16x128xf32> to vector<16xf32>
    %99 = vector.shape_cast %98 : vector<16xf32> to vector<16x1xf32>
    %100 = vector.broadcast %99 : vector<16x1xf32> to vector<16x128xf32>
    %101 = arith.divf %97, %100 : vector<16x128xf32>
    %c0_40 = arith.constant 0 : index
    %c0_41 = arith.constant 0 : index
    %102 = vector.load %arg6[%c0_40, %c0_41] : memref<16x8xf32, #tpu.memory_space<vmem>>, vector<16x1xf32>
    %c0_42 = arith.constant 0 : index
    %c1_43 = arith.constant 1 : index
    %103 = vector.load %arg6[%c0_42, %c1_43] : memref<16x8xf32, #tpu.memory_space<vmem>>, vector<16x1xf32>
    %c0_44 = arith.constant 0 : index
    %c2_45 = arith.constant 2 : index
    %104 = vector.load %arg6[%c0_44, %c2_45] : memref<16x8xf32, #tpu.memory_space<vmem>>, vector<16x1xf32>
    %c0_46 = arith.constant 0 : index
    %c3 = arith.constant 3 : index
    %105 = vector.load %arg6[%c0_46, %c3] : memref<16x8xf32, #tpu.memory_space<vmem>>, vector<16x1xf32>
    %c0_47 = arith.constant 0 : index
    %c4 = arith.constant 4 : index
    %106 = vector.load %arg6[%c0_47, %c4] : memref<16x8xf32, #tpu.memory_space<vmem>>, vector<16x1xf32>
    %c0_48 = arith.constant 0 : index
    %c5 = arith.constant 5 : index
    %107 = vector.load %arg6[%c0_48, %c5] : memref<16x8xf32, #tpu.memory_space<vmem>>, vector<16x1xf32>
    %108 = arith.subf %104, %102 : vector<16x1xf32>
    %109 = arith.subf %105, %103 : vector<16x1xf32>
    %cst_49 = arith.constant 5.000000e-01 : f32
    %110 = vector.broadcast %cst_49 : f32 to vector<16x1xf32>
    %111 = arith.mulf %110, %108 : vector<16x1xf32>
    %112 = arith.addf %102, %111 : vector<16x1xf32>
    %cst_50 = arith.constant 5.000000e-01 : f32
    %113 = vector.broadcast %cst_50 : f32 to vector<16x1xf32>
    %114 = arith.mulf %113, %109 : vector<16x1xf32>
    %115 = arith.addf %103, %114 : vector<16x1xf32>
    %116 = vector.shape_cast %72 : vector<1x128xi1> to vector<1x128xi1>
    %117 = vector.broadcast %116 : vector<1x128xi1> to vector<16x128xi1>
    %118 = vector.shape_cast %108 : vector<16x1xf32> to vector<16x1xf32>
    %119 = vector.broadcast %118 : vector<16x1xf32> to vector<16x128xf32>
    %120 = vector.shape_cast %109 : vector<16x1xf32> to vector<16x1xf32>
    %121 = vector.broadcast %120 : vector<16x1xf32> to vector<16x128xf32>
    %122 = arith.select %117, %119, %121 : vector<16x128xi1>, vector<16x128xf32>
    %123 = vector.shape_cast %72 : vector<1x128xi1> to vector<1x128xi1>
    %124 = vector.broadcast %123 : vector<1x128xi1> to vector<16x128xi1>
    %125 = vector.shape_cast %112 : vector<16x1xf32> to vector<16x1xf32>
    %126 = vector.broadcast %125 : vector<16x1xf32> to vector<16x128xf32>
    %127 = vector.shape_cast %115 : vector<16x1xf32> to vector<16x1xf32>
    %128 = vector.broadcast %127 : vector<16x1xf32> to vector<16x128xf32>
    %129 = arith.select %124, %126, %128 : vector<16x128xi1>, vector<16x128xf32>
    %130 = vector.shape_cast %72 : vector<1x128xi1> to vector<1x128xi1>
    %131 = vector.broadcast %130 : vector<1x128xi1> to vector<16x128xi1>
    %132 = vector.shape_cast %107 : vector<16x1xf32> to vector<16x1xf32>
    %133 = vector.broadcast %132 : vector<16x1xf32> to vector<16x128xf32>
    %134 = vector.shape_cast %106 : vector<16x1xf32> to vector<16x1xf32>
    %135 = vector.broadcast %134 : vector<16x1xf32> to vector<16x128xf32>
    %136 = arith.select %131, %133, %135 : vector<16x128xi1>, vector<16x128xf32>
    %137 = vector.broadcast %85 : vector<1x128xf32> to vector<16x128xf32>
    %138 = arith.mulf %21, %137 : vector<16x128xf32>
    %c2_i32_51 = arith.constant 2 : i32
    %139 = tpu.dynamic_rotate %138 by %c2_i32_51 dim 1 : vector<16x128xf32>, i32 -> vector<16x128xf32>
    %c126_i32 = arith.constant 126 : i32
    %140 = tpu.dynamic_rotate %138 by %c126_i32 dim 1 : vector<16x128xf32>, i32 -> vector<16x128xf32>
    %141 = vector.shape_cast %54 : vector<1x128xi1> to vector<1x128xi1>
    %142 = vector.broadcast %141 : vector<1x128xi1> to vector<16x128xi1>
    %143 = arith.select %142, %139, %138 : vector<16x128xi1>, vector<16x128xf32>
    %144 = vector.shape_cast %54 : vector<1x128xi1> to vector<1x128xi1>
    %145 = vector.broadcast %144 : vector<1x128xi1> to vector<16x128xi1>
    %146 = arith.select %145, %138, %140 : vector<16x128xi1>, vector<16x128xf32>
    %cst_52 = arith.constant 4.13516665 : f32
    %147 = vector.broadcast %cst_52 : f32 to vector<16x128xf32>
    %148 = arith.minimumf %146, %147 : vector<16x128xf32>
    %149 = arith.mulf %143, %122 : vector<16x128xf32>
    %150 = arith.addf %129, %149 : vector<16x128xf32>
    %151 = math.exp %148 : vector<16x128xf32>
    %152 = vector.broadcast %88 : vector<1x128xf32> to vector<16x128xf32>
    %153 = arith.mulf %152, %151 : vector<16x128xf32>
    %154 = arith.mulf %153, %122 : vector<16x128xf32>
    %155 = arith.addf %150, %154 : vector<16x128xf32>
    %cst_53 = arith.constant 0.000000e+00 : f32
    %156 = vector.broadcast %cst_53 : f32 to vector<16x128xf32>
    %157 = arith.maximumf %156, %155 : vector<16x128xf32>
    %158 = arith.minimumf %136, %157 : vector<16x128xf32>
    %c25_i32_54 = arith.constant 25 : i32
    %159 = tpu.dynamic_rotate %21 by %c25_i32_54 dim 1 : vector<16x128xf32>, i32 -> vector<16x128xf32>
    %160 = vector.shape_cast %47 : vector<1x128xi1> to vector<1x128xi1>
    %161 = vector.broadcast %160 : vector<1x128xi1> to vector<16x128xi1>
    %162 = arith.select %161, %158, %101 : vector<16x128xi1>, vector<16x128xf32>
    %163 = vector.shape_cast %52 : vector<1x128xi1> to vector<1x128xi1>
    %164 = vector.broadcast %163 : vector<1x128xi1> to vector<16x128xi1>
    %165 = arith.select %164, %159, %162 : vector<16x128xi1>, vector<16x128xf32>
    %c0_55 = arith.constant 0 : index
    %c0_56 = arith.constant 0 : index
    %166 = vector.load %arg7[%c0_55, %c0_56] : memref<16x128xf32, #tpu.memory_space<vmem>>, vector<16x128xf32>
    tpu.vector_store %arg7[%c0_55, %c0_56], %165 {strides = array<i32>} : memref<16x128xf32, #tpu.memory_space<vmem>>, vector<16x128xf32>,
    return
  }
  func.func @transform_0(%arg0: i32) -> (i32, i32) {
    %c0_i32 = arith.constant 0 : i32
    %c0_i32_0 = arith.constant 0 : i32
    return %arg0, %c0_i32 : i32, i32
  }
  func.func @transform_1(%arg0: i32) -> (i32, i32) {
    %c0_i32 = arith.constant 0 : i32
    %c0_i32_0 = arith.constant 0 : i32
    %c0_i32_1 = arith.constant 0 : i32
    return %c0_i32, %c0_i32_0 : i32, i32
  }
  func.func @transform_2(%arg0: i32) -> (i32, i32) {
    %c0_i32 = arith.constant 0 : i32
    %c0_i32_0 = arith.constant 0 : i32
    %c0_i32_1 = arith.constant 0 : i32
    return %c0_i32, %c0_i32_0 : i32, i32
  }
  func.func @transform_3(%arg0: i32) -> (i32, i32) {
    %c0_i32 = arith.constant 0 : i32
    %c0_i32_0 = arith.constant 0 : i32
    %c0_i32_1 = arith.constant 0 : i32
    return %c0_i32, %c0_i32_0 : i32, i32
  }
  func.func @transform_4(%arg0: i32) -> (i32, i32) {
    %c0_i32 = arith.constant 0 : i32
    %c0_i32_0 = arith.constant 0 : i32
    %c0_i32_1 = arith.constant 0 : i32
    return %c0_i32, %c0_i32_0 : i32, i32
  }
  func.func @transform_5(%arg0: i32) -> (i32, i32) {
    %c0_i32 = arith.constant 0 : i32
    %c0_i32_0 = arith.constant 0 : i32
    return %arg0, %c0_i32 : i32, i32
  }
  func.func @transform_6(%arg0: i32) -> (i32, i32) {
    %c0_i32 = arith.constant 0 : i32
    %c0_i32_0 = arith.constant 0 : i32
    return %arg0, %c0_i32 : i32, i32
  }
}

</mosaic_0001>

<bundles_post_ra>
// kernel: tpu_custom_call.1
= control target key start
LH: loop header
LB: loop body
LE: loop exit
PB: predicated region body
PF: predicated region fallthrough
CT: control target
= control target key end

     0   :  { %11 = vsyncpa [#allocation3], 0  ;;  %s1052_s0 = inlined_call_operand.vmem [shape: bf16[16,64], index: 0, kind: input, shape index: {}]   ;;  %s1053_s1 = inlined_call_operand.hbm [shape: bf16[64,128], index: 1, kind: input, shape index: {}]   ;;  %s1054_s2 = inlined_call_operand.hbm [shape: bf16[128,128], index: 2, kind: input, shape index: {}]   ;;  %s1055_s3 = inlined_call_operand.hbm [shape: bf16[128,128], index: 3, kind: input, shape index: {}]   ;;  %s1056_s4 = inlined_call_operand.vmem [shape: f32[8,128], index: 4, kind: input, shape index: {}]   ;;  %s1057_s5 = inlined_call_operand.vmem [shape: f32[16,8], index: 5, kind: input, shape index: {}]   ;;  %s1058_s6 = inlined_call_operand.hbm [shape: f32[16,128], index: 6, kind: output, shape index: {}]  }
   0x1   :  { %12 = vsyncpa [#allocation6], 0 }
   0x2   :  { %13 = vsyncpa [#allocation4], 0  ;;  %s849_s21 = smov [#allocation5]   ;;  %s850_s23 = smov [#allocation2]  }
   0x3   :  { %s33_s22 = sshll.u32 %s849_s21, 4  ;;  %s21_s24 = sshll.u32 %s850_s23, 4  ;;  %s34_s22 = int_to_ptr.vmem [resolvable:$true] %s33_s22  ;;  %s22_s24 = int_to_ptr.vmem [resolvable:$true] %s21_s24 }
   0x4   :  { %s771_s25 = scalar_lea.vmem %s34_s22, 1024  ;;  %p776_p1 = scmp.lt.s32.totalorder %s34_s22, %s34_s22 }
   0x5   :  { %p772_p0 = scmp.ne.s32.totalorder %s34_s22, %s771_s25  ;;  %p777_p2 = scmp.lt.s32.totalorder %s771_s25, %s771_s25 }
   0x7   :  { %p778_p3 = por %p777_p2, %p776_p1 }
   0x9   :  { %p779_p4 = pnand %p778_p3, %p772_p0 }
   0xb   :  { %782 = shalt.err (!%p779_p4)
}
   0xc   :  { %s851_s26 = smov 64   ;;  %s852_s27 = smov 4  }
   0xd   :  { %39 = dma.hbm_to_vmem [thread:$0]  %s1054_s2, 1024, %s34_s22, [#allocation6], %s851_s26, %s851_s26, %s852_s27  }
   0xe   :  { %s791_s30 = scalar_lea.vmem %s22_s24, 512  ;;  %p796_p6 = scmp.lt.s32.totalorder %s22_s24, %s22_s24 }
   0xf   :  { %p792_p5 = scmp.ne.s32.totalorder %s22_s24, %s791_s30  ;;  %p797_p7 = scmp.lt.s32.totalorder %s791_s30, %s791_s30 }
  0x11   :  { %p798_p8 = por %p797_p7, %p796_p6 }
  0x13   :  { %p799_p9 = pnand %p798_p8, %p792_p5 }
  0x15   :  { %802 = shalt.err (!%p799_p9)
}
  0x16   :  { %27 = dma.hbm_to_vmem [thread:$0]  %s1053_s1, 512, %s22_s24, [#allocation3], %s851_s26, %s851_s26, %s852_s27  }
  0x17   :  { %s853_s9 = smov [#allocation7]  }
  0x18   :  { %s45_s10 = sshll.u32 %s853_s9, 4  ;;  %s46_s10 = int_to_ptr.vmem [resolvable:$true] %s45_s10 }
  0x19   :  { %s811_s11 = scalar_lea.vmem %s46_s10, 1024  ;;  %p816_p11 = scmp.lt.s32.totalorder %s46_s10, %s46_s10 }
  0x1a   :  { %p812_p10 = scmp.ne.s32.totalorder %s46_s10, %s811_s11  ;;  %p817_p12 = scmp.lt.s32.totalorder %s811_s11, %s811_s11 }
  0x1c   :  { %p818_p13 = por %p817_p12, %p816_p11 }
  0x1e   :  { %p819_p0 = pnand %p818_p13, %p812_p10 }
  0x20   :  { %822 = shalt.err (!%p819_p0)
}
  0x21   :  { %51 = dma.hbm_to_vmem [thread:$0]  %s1055_s3, 1024, %s46_s10, [#allocation6], %s851_s26, %s851_s26, %s852_s27  }
  0x22   :  { %843 = dma.done.wait [#allocation3], 512  }
  0x23   :  { %844 = vsyncadd [#allocation3], 4294966784 }
  0x24   :  { %845 = dma.done.wait [#allocation6], 2048  }
  0x25   :  { %846 = vsyncadd [#allocation6], 4294965248  ;;  %v854_v0 = vmov 0.0   ;;  %vm855_vm0 = vmmov 0   ;;  %v730_v1 = vld [vmem:[#allocation2 + $0x18] sm:$0xff]   ;;  %v731_v2 = vld [vmem:[#allocation2 + $0x10] sm:$0xff]   ;;  %v381_v52 = vlaneseq }
  0x26   :  { %647 = vmatprep.subr.bf16.mxu0 %v854_v0  ;;  %655 = vmatprep.mubr.msk.bf16.mxu0 %vm855_vm0, %v854_v0  ;;  %v735_v3 = vld [vmem:[#allocation5 + $0x38] sm:$0xff]   ;;  %v732_v4 = vld [vmem:[#allocation2 + $0x8] sm:$0xff]   ;;  %v736_v5 = vld [vmem:[#allocation5 + $0x30] sm:$0xff]   ;;  %vm112_vm1 = vcmask 523264   ;;  %s856_s14 = smov 2   ;;  %v857_v36 = vmov 2  }
  0x27   :  { %659 = vmatprep.subr.bf16.mxu1 %v854_v0  ;;  %675 = vmatprep.mubr.msk.bf16.mxu1 %vm855_vm0, %v854_v0  ;;  %v733_v6 = vld [vmem:[#allocation2] sm:$0xff]   ;;  %v737_v7 = vld [vmem:[#allocation5 + $0x28] sm:$0xff]   ;;  %v739_v10 = vld [vmem:[#allocation5 + $0x18] sm:$0xff]   ;;  %s858_s18 = smov 126   ;;  %v859_v40 = vmov 3   ;;  %v967_v53 = vand.u32 127, %v381_v52 }
  0x28   :  { %648 = vmatpush3.bf16.msra.mxu0 %v730_v1  ;;  %660 = vmatpush3.bf16.msra.mxu1 %v735_v3  ;;  %v734_v8 = vld [vmem:[%s1052_s0] sm:$0xff]   ;;  %v740_v11 = vld [vmem:[#allocation5 + $0x10] sm:$0xff]   ;;  %v741_v12 = vld [vmem:[#allocation5 + $0x8] sm:$0xff]   ;;  %s867_s23 = smov [#allocation8]  }
  0x29   :  { %649 = vmatprep.subr.bf16.mxu0 %v854_v0  ;;  %661 = vmatprep.subr.bf16.mxu1 %v854_v0  ;;  %v738_v9 = vld [vmem:[#allocation5 + $0x20] sm:$0xff]   ;;  %v743_v15 = vld [vmem:[#allocation7 + $0x38] sm:$0xff]   ;;  %v946_v16 = vld [vmem:[%s1057_s5 + $0x8] sm:$0xff]  ;;  %v621_v54 = vadd.s32 4294967291, %v967_v53  ;;  %vm396_vm13 = vcmp.lt.s32.totalorder %v967_v53, 5  ;;  %vm397_vm15 = vcmp.ge.s32.totalorder %v967_v53, 5 }
  0x2a   :  { %v742_v13 = vld [vmem:[#allocation5] sm:$0xff]   ;;  %v744_v17 = vld [vmem:[#allocation7 + $0x30] sm:$0xff]   ;;  %v745_v18 = vld [vmem:[#allocation7 + $0x28] sm:$0xff]   ;;  %721 = vset.pattern.permute.xlu1 %v857_v36  ;;  %720 = vset.pattern.permute.xlu0 %v857_v36  ;;  %s583_s24 = sshll.u32 %s867_s23, 4  ;;  %s584_s24 = int_to_ptr.vmem [resolvable:$true] %s583_s24 }
  0x2b   :  { %v939_v14 = vld [vmem:[%s1057_s5] sm:$0xff]  ;;  %v747_v20 = vld [vmem:[#allocation7 + $0x18] sm:$0xff]   ;;  %v748_v31 = vld [vmem:[#allocation7 + $0x10] sm:$0xff]   ;;  %v385_v55 = vsub.s32 0, %v621_v54  ;;  %vm384_vm2 = vcmp.lt.s32.totalorder %v621_v54, 0  ;;  %s823_s25 = scalar_lea.vmem %s584_s24, 256  ;;  %p828_p2 = scmp.lt.s32.totalorder %s584_s24, %s584_s24 }
  0x2c   :  { %650 = vmatpush3.bf16.msra.mxu0 %v731_v2  ;;  %662 = vmatpush3.bf16.msra.mxu1 %v736_v5  ;;  %v746_v19 = vld [vmem:[#allocation7 + $0x20] sm:$0xff]   ;;  %v749_v32 = vld [vmem:[#allocation7 + $0x8] sm:$0xff]   ;;  %v860_v2 = vmov 1   ;;  %p824_p1 = scmp.ne.s32.totalorder %s584_s24, %s823_s25  ;;  %p829_p3 = scmp.lt.s32.totalorder %s823_s25, %s823_s25 }
  0x2d   :  { %651 = vmatprep.subr.bf16.mxu0 %v854_v0  ;;  %663 = vmatprep.subr.bf16.mxu1 %v854_v0  ;;  %v596_v21 = vld [vmem:[%s1056_s4] ss:$0 sm:$0xff]  ;;  %v603_v42 = vld [vmem:[%s1056_s4 + $0x1] ss:$0 sm:$0xff]  ;;  %v622_v56 = vmin.u32 %v621_v54, %v385_v55 }
  0x2e   :  { %448 = vrot.lane.b32.xlu0 %v939_v14, %s856_s14  ;;  %v750_v33 = vld [vmem:[#allocation7] sm:$0xff]   ;;  %p830_p4 = por %p829_p3, %p828_p2 }
  0x2f   :  { %v388_v57 = vand.u32 3, %v622_v56 }
  0x30   :  { %652 = vmatpush3.bf16.msra.mxu0 %v732_v4  ;;  %664 = vmatpush3.bf16.msra.mxu1 %v737_v7  ;;  %p831_p5 = pnand %p830_p4, %p824_p1 }
  0x31   :  { %653 = vmatprep.subr.bf16.mxu0 %v854_v0  ;;  %665 = vmatprep.subr.bf16.mxu1 %v854_v0  ;;  %v389_v58 = vsub.s32 0, %v388_v57 }
  0x32   :  { %450 = vrot.lane.b32.xlu0 %v946_v16, %s856_s14 }
  0x33   :  { %v390_v59 = vsel %vm384_vm2, %v389_v58, %v388_v57  ;;  %vm401_vm2 = vcmp.lt.s32.totalorder %v967_v53, 50 }
  0x34   :  { %654 = vmatpush3.bf16.msra.mxu0 %v733_v6  ;;  %666 = vmatpush3.bf16.msra.mxu1 %v738_v9  ;;  %vm391_vm3 = vcmp.ne.s32.totalorder %v390_v59, 0  ;;  %vm392_vm4 = vcmp.lt.s32.totalorder %v390_v59, 0  ;;  %v394_v60 = vadd.s32 4, %v390_v59 }
  0x35   :  { %679 = vmatprep.subr.bf16.mxu0 %v854_v0  ;;  %667 = vmatprep.subr.bf16.mxu1 %v854_v0  ;;  %vm393_vm5 = vmand %vm392_vm4, %vm391_vm3 }
  0x36   :  { %v970_v61 = vsel %vm393_vm5, %v394_v60, %v390_v59 }
  0x37   :  { %656 = vmatmul.mubr.msk.bf16.vlgmr.msra.gmra.mxu0 %vm112_vm1, %v734_v8  ;;  %v405_v63 = vsub.s32 0, %v970_v61  ;;  %vm404_vm6 = vcmp.lt.s32.totalorder %v970_v61, 0  ;;  %vm418_vm11 = vcmp.eq.s32.totalorder %v970_v61, 1  ;;  %vm417_vm12 = vcmp.eq.s32.totalorder %v970_v61, 0 }
  0x38   :  { %695 = vmatprep.mubr.msk.bf16.mxu0 %vm855_vm0, %v854_v0  ;;  %668 = vmatpush3.bf16.msra.mxu1 %v739_v10  ;;  %vm403_vm14 = vcmp.ge.s32.totalorder %v970_v61, 2  ;;  %vm398_vm0 = vcmp.lt.s32.totalorder %v967_v53, 25  ;;  %vm400_vm1 = vcmp.ge.s32.totalorder %v967_v53, 25 }
  0x39   :  { %669 = vmatprep.subr.bf16.mxu1 %v854_v0  ;;  %680 = vmatpush3.bf16.msra.mxu0 %v743_v15  ;;  %v862_v15 = vmov 0.2   ;;  %vm399_vm3 = vmand %vm397_vm15, %vm398_vm0 }
  0x3a   :  { %681 = vmatprep.subr.bf16.mxu0 %v854_v0  ;;  %vm402_vm4 = vmand %vm400_vm1, %vm401_vm2 }
  0x3c   :  { %670 = vmatpush3.bf16.msra.mxu1 %v740_v11 }
  0x3d   :  { %671 = vmatprep.subr.bf16.mxu1 %v854_v0  ;;  %682 = vmatpush3.bf16.msra.mxu0 %v744_v17  ;;  %v419_v17 = vsel %vm418_vm11, 0.1, %v862_v15 }
  0x3e   :  { %683 = vmatprep.subr.bf16.mxu0 %v854_v0 }
  0x40   :  { %672 = vmatpush3.bf16.msra.mxu1 %v741_v12 }
  0x41   :  { %673 = vmatprep.subr.bf16.mxu1 %v854_v0  ;;  %684 = vmatpush3.bf16.msra.mxu0 %v745_v18  ;;  %v612_v18 = vld [vmem:[%s1056_s4 + $0x2] ss:$0 sm:$0xff]  ;;  %s865_s4 = smov 25  }
  0x42   :  { %685 = vmatprep.subr.bf16.mxu0 %v854_v0 }
  0x44   :  { %674 = vmatpush3.bf16.msra.mxu1 %v742_v13  ;;  %v861_v13 = vmov 0  }
  0x45   :  { %686 = vmatpush3.bf16.msra.mxu0 %v746_v19 }
  0x46   :  { %687 = vmatprep.subr.bf16.mxu0 %v854_v0 }
  0x49   :  { %688 = vmatpush3.bf16.msra.mxu0 %v747_v20  ;;  %v420_v20 = vsel %vm417_vm12, 0.1, %v419_v17 }
  0x4a   :  { %689 = vmatprep.subr.bf16.mxu0 %v854_v0 }
  0x4d   :  { %690 = vmatpush3.bf16.msra.mxu0 %v748_v31  ;;  %v863_v31 = vmov 5  }
  0x4e   :  { %691 = vmatprep.subr.bf16.mxu0 %v854_v0 }
  0x51   :  { %692 = vmatpush3.bf16.msra.mxu0 %v749_v32 }
  0x52   :  { %693 = vmatprep.subr.bf16.mxu0 %v854_v0  ;;  %v623_v0 = vmin.u32 %v405_v63, %v970_v61 }
  0x54   :  { %v408_v1 = vand.u32 1, %v623_v0 }
  0x55   :  { %694 = vmatpush3.bf16.msra.mxu0 %v750_v33 }
  0x56   :  { %v409_v4 = vsub.s32 0, %v408_v1 }
  0x58   :  { %v410_v5 = vsel %vm404_vm6, %v409_v4, %v408_v1 }
  0x59   :  { %vm411_vm7 = vcmp.ne.s32.totalorder %v410_v5, 0  ;;  %vm412_vm8 = vcmp.lt.s32.totalorder %v410_v5, 0  ;;  %v414_v6 = vadd.s32 2, %v410_v5 }
  0x5a   :  { %vm413_vm9 = vmand %vm412_vm8, %vm411_vm7 }
  0x5b   :  { %v415_v7 = vsel %vm413_vm9, %v414_v6, %v410_v5 }
  0x5c   :  { %vm975_vm10 = vcmp.eq.s32.totalorder %v415_v7, 0 }
  0xa0   :  { %v449_v34 = vpop.permute.xlu0 %448 }
  0xa1   :  { %v454_v35 = vsub.f32 %v939_v14, %v449_v34  ;;  %v864_v34 = vmov 4  }
  0xa3   :  { %472 = vperm.xlu0 %720, %v454_v35   ;;  %v456_v37 = vmul.f32 0.5, %v454_v35 }
  0xa4   :  { %v451_v38 = vpop.permute.xlu0 %450 }
  0xa5   :  { %v455_v39 = vsub.f32 %v946_v16, %v451_v38 }
  0xa7   :  { %477 = vperm.xlu1 %721, %v455_v39   ;;  %460 = vrot.lane.b32.xlu0 %v456_v37, %s858_s18  ;;  %v457_v41 = vmul.f32 0.5, %v455_v39 }
  0xa8   :  { %725 = vset.pattern.permute.xlu0 %v860_v2 }
  0xab   :  { %722 = vset.pattern.permute.xlu1 %v859_v40 }
  0xac   :  { %481 = vperm.xlu1 %722, %v454_v35  }
  0xb0   :  { %485 = vperm.xlu1 %722, %v455_v39  }
  0xb4   :  { %462 = vrot.lane.b32.xlu1 %v457_v41, %s858_s18  ;;  %v866_v41 = vmov -0.5  }
  0xb5   :  { %723 = vset.pattern.permute.xlu1 %v861_v13 }
  0xf7   :  { %v150_v22 = vpop.f32.mrf.mxu0 }
  0xf8   :  { %v151_v24 = vadd.f32 %v596_v21, %v150_v22 }
  0xf9   :  { %v657_v23 = vpop.f32.mrf.mxu0 }
  0xfa   :  { %v157_v28 = vmax.f32 %v151_v24, 0.0 }
  0xfb   :  { %v153_v25 = vpop.f32.mrf.mxu0 }
  0xfc   :  { %v154_v26 = vadd.f32 %v596_v21, %v153_v25 }
  0xfd   :  { %v658_v27 = vpop.f32.mrf.mxu0 }
  0xfe   :  { %v158_v29 = vmax.f32 %v154_v26, 0.0 }
 0x100   :  { %v159_v30 = vpack.c.bf16 %v158_v29, %v157_v28 }
 0x102   :  { %676 = vmatmul.mubr.bf16.vlgmr.msra.gmra.mxu1 %v159_v30 }
 0x11e   :  { %v473_v10 = vpop.permute.xlu0 %472 }
 0x122   :  { %v478_v62 = vpop.permute.xlu1 %477  ;;  %v461_v33 = vpop.permute.xlu0 %460 }
 0x123   :  { %v466_v35 = vadd.f32 %v461_v33, %v939_v14 }
 0x127   :  { %v482_v3 = vpop.permute.xlu1 %481 }
 0x128   :  { %v985_v12 = vsel %vm975_vm10, %v473_v10, %v482_v3 }
 0x12b   :  { %v486_v9 = vpop.permute.xlu1 %485 }
 0x12c   :  { %v981_v11 = vsel %vm975_vm10, %v478_v62, %v486_v9 }
 0x12f   :  { %v463_v23 = vpop.permute.xlu1 %462 }
 0x130   :  { %v467_v28 = vadd.f32 %v463_v23, %v946_v16 }
 0x1c2   :  { %v262_v43 = vpop.f32.mrf.mxu1 }
 0x1c3   :  { %v263_v45 = vadd.f32 %v603_v42, %v262_v43 }
 0x1c4   :  { %v677_v44 = vpop.f32.mrf.mxu1 }
 0x1c5   :  { %v269_v49 = vmax.f32 %v263_v45, 0.0 }
 0x1c6   :  { %v265_v46 = vpop.f32.mrf.mxu1 }
 0x1c7   :  { %v266_v47 = vadd.f32 %v603_v42, %v265_v46 }
 0x1c8   :  { %v678_v48 = vpop.f32.mrf.mxu1 }
 0x1c9   :  { %v270_v50 = vmax.f32 %v266_v47, 0.0 }
 0x1cb   :  { %v271_v51 = vpack.c.bf16 %v270_v50, %v269_v49 }
 0x1cd   :  { %696 = vmatmul.mubr.bf16.vlgmr.msra.gmra.mxu0 %v271_v51 }
 0x28d   :  { %v374_v19 = vpop.f32.mrf.mxu0 }
 0x28e   :  { %v375_v21 = vadd.f32 %v612_v18, %v374_v19 }
 0x28f   :  { %v697_v22 = vpop.f32.mrf.mxu0 }
 0x290   :  { %v993_v24 = vmul.f32 %v420_v20, %v375_v21  ;;  %v424_v25 = vsel %vm396_vm13, %v375_v21, -inf }
 0x291   :  { %426 = vmax.xlane.f32.xlu1 %v424_v25  ;;  %v377_v26 = vpop.f32.mrf.mxu0 }
 0x292   :  { %v995_v27 = vadd.f32 %v612_v18, %v377_v26  ;;  %534 = vrot.lane.b32.xlu0 %v993_v24, %s858_s18 }
 0x293   :  { %v698_v29 = vpop.f32.mrf.mxu0 }
 0x294   :  { %v425_v30 = vsel %vm396_vm13, %v995_v27, -inf  ;;  %v1003_v32 = vmul.f32 %v420_v20, %v995_v27 }
 0x295   :  { %428 = vmax.xlane.f32.xlu1 %v425_v30 }
 0x296   :  { %505 = vperm.xlu0 %725, %v467_v28  }
 0x29a   :  { %726 = vset.pattern.permute.xlu0 %v863_v31 }
 0x29b   :  { %511 = vperm.xlu0 %726, %v939_v14  }
 0x29f   :  { %536 = vrot.lane.b32.xlu0 %v1003_v32, %s858_s18 }
 0x2a0   :  { %729 = vset.pattern.permute.xlu0 %v864_v34 }
 0x2a6   :  { %492 = vperm.xlu1 %723, %v466_v35  }
 0x2aa   :  { %497 = vperm.xlu1 %723, %v467_v28  }
 0x2ae   :  { %724 = vset.pattern.permute.xlu1 %v860_v2 }
 0x2af   :  { %501 = vperm.xlu1 %724, %v466_v35  }
 0x2b3   :  { %530 = vrot.lane.b32.xlu1 %v993_v24, %s856_s14 }
 0x2b4   :  { %727 = vset.pattern.permute.xlu1 %v863_v31 }
 0x2b7   :  { %515 = vperm.xlu1 %727, %v946_v16  }
 0x2bb   :  { %728 = vset.pattern.permute.xlu1 %v864_v34 }
 0x2bc   :  { %519 = vperm.xlu1 %728, %v939_v14   ;;  %v421_v14 = vsel %vm403_vm14, 0.5, %v866_v41 }
 0x2c0   :  { %532 = vrot.lane.b32.xlu1 %v1003_v32, %s856_s14 }
 0x2c4   :  { %564 = vrot.lane.b32.xlu1 %v375_v21, %s865_s4 }
 0x304   :  { %v535_v36 = vpop.permute.xlu0 %534 }
 0x305   :  { %v542_v37 = vsel %vm403_vm14, %v993_v24, %v535_v36 }
 0x306   :  { %v544_v38 = vmin.f32 %v542_v37, 4.1351666 }
 0x308   :  { %v550_v39 = vmul.f32 1.442695, %v544_v38 }
 0x30a   :  { %751 = vpow2.f32 %v550_v39 }
 0x311   :  { %v506_v40 = vpop.permute.xlu0 %505 }
 0x316   :  { %v512_v42 = vpop.permute.xlu0 %511 }
 0x317   :  { %v752_v43 = vpop.eup %751 }
 0x318   :  { %v554_v44 = vmul.f32 %v752_v43, %v421_v14 }
 0x31a   :  { %v427_v45 = vpop.xlane.xlu1 %426  ;;  %v537_v46 = vpop.permute.xlu0 %536  ;;  %v556_v47 = vmul.f32 %v554_v44, %v985_v12 }
 0x31b   :  { %v430_v48 = vsub.f32 %v424_v25, %v427_v45  ;;  %v543_v49 = vsel %vm403_vm14, %v1003_v32, %v537_v46 }
 0x31c   :  { %v545_v50 = vmin.f32 %v543_v49, 4.1351666 }
 0x31d   :  { %v432_v51 = vmul.f32 1.442695, %v430_v48 }
 0x31e   :  { %v552_v52 = vmul.f32 1.442695, %v545_v50  ;;  %v429_v54 = vpop.xlane.xlu1 %428 }
 0x31f   :  { %753 = vpow2.f32 %v432_v51  ;;  %v431_v55 = vsub.f32 %v425_v30, %v429_v54 }
 0x320   :  { %755 = vpow2.f32 %v552_v52 }
 0x321   :  { %v434_v56 = vmul.f32 1.442695, %v431_v55 }
 0x322   :  { %v493_v57 = vpop.permute.xlu1 %492 }
 0x323   :  { %757 = vpow2.f32 %v434_v56 }
 0x326   :  { %v498_v58 = vpop.permute.xlu1 %497 }
 0x327   :  { %v509_v19 = vsel %vm975_vm10, %v498_v58, %v506_v40 }
 0x32a   :  { %v502_v59 = vpop.permute.xlu1 %501 }
 0x32b   :  { %v508_v1 = vsel %vm975_vm10, %v493_v57, %v502_v59 }
 0x32c   :  { %v754_v60 = vpop.eup %753 }
 0x32d   :  { %v756_v62 = vpop.eup %755  ;;  %436 = vadd.xlane.f32.xlu0 %v754_v60 }
 0x32e   :  { %v531_v63 = vpop.permute.xlu1 %530  ;;  %v555_v0 = vmul.f32 %v756_v62, %v421_v14 }
 0x32f   :  { %v540_v2 = vsel %vm403_vm14, %v531_v63, %v993_v24 }
 0x330   :  { %v758_v3 = vpop.eup %757  ;;  %v546_v4 = vmul.f32 %v540_v2, %v985_v12  ;;  %v557_v5 = vmul.f32 %v555_v0, %v981_v11 }
 0x331   :  { %438 = vadd.xlane.f32.xlu1 %v758_v3 }
 0x332   :  { %v548_v6 = vadd.f32 %v546_v4, %v508_v1  ;;  %v516_v7 = vpop.permute.xlu1 %515 }
 0x334   :  { %v558_v9 = vadd.f32 %v556_v47, %v548_v6 }
 0x336   :  { %v560_v10 = vmax.f32 %v558_v9, 0.0 }
 0x337   :  { %v520_v13 = vpop.permute.xlu1 %519 }
 0x338   :  { %v526_v15 = vsel %vm975_vm10, %v512_v42, %v520_v13 }
 0x339   :  { %v562_v17 = vmin.f32 %v526_v15, %v560_v10 }
 0x33b   :  { %v533_v18 = vpop.permute.xlu1 %532 }
 0x33c   :  { %v541_v12 = vsel %vm403_vm14, %v533_v18, %v1003_v32 }
 0x33d   :  { %v547_v20 = vmul.f32 %v541_v12, %v981_v11 }
 0x33f   :  { %v549_v21 = vadd.f32 %v547_v20, %v509_v19  ;;  %v565_v23 = vpop.permute.xlu1 %564 }
 0x341   :  { %v559_v22 = vadd.f32 %v557_v5, %v549_v21 }
 0x342   :  { %566 = vrot.lane.b32.xlu1 %v995_v27, %s865_s4 }
 0x343   :  { %523 = vperm.xlu0 %729, %v946_v16   ;;  %v561_v28 = vmax.f32 %v559_v22, 0.0 }
 0x3b6   :  { %v437_v24 = vpop.xlane.xlu0 %436 }
 0x3b7   :  { %759 = vrcp.f32 %v437_v24 }
 0x3ba   :  { %v439_v25 = vpop.xlane.xlu1 %438 }
 0x3bb   :  { %761 = vrcp.f32 %v439_v25 }
 0x3be   :  { %v524_v26 = vpop.permute.xlu0 %523  ;;  %v567_v33 = vpop.permute.xlu1 %566 }
 0x3bf   :  { %v527_v61 = vsel %vm975_vm10, %v516_v7, %v524_v26 }
 0x3c0   :  { %v563_v29 = vmin.f32 %v527_v61, %v561_v28 }
 0x3c4   :  { %v760_v16 = vpop.eup %759 }
 0x3c5   :  { %v441_v11 = vmul.f32 %v760_v16, %v754_v60 }
 0x3c7   :  { %v570_v27 = vsel %vm399_vm3, %v562_v17, %v441_v11 }
 0x3c8   :  { %v762_v30 = vpop.eup %761  ;;  %v574_v31 = vsel %vm402_vm4, %v565_v23, %v570_v27 }
 0x3c9   :  { %v443_v8 = vmul.f32 %v762_v30, %v758_v3  ;;  %576 = vst [vmem:[#allocation8] sm:$0xff] %v574_v31 }
 0x3cb   :  { %v571_v32 = vsel %vm399_vm3, %v563_v29, %v443_v8 }
 0x3cc   :  { %v575_v34 = vsel %vm402_vm4, %v567_v33, %v571_v32 }
 0x3cd   :  { %577 = vst [vmem:[#allocation8 + $0x8] sm:$0xff] %v575_v34 }
 0x3ce   :  { %834 = shalt.err (!%p831_p5)
}
 0x3cf   :  { %s868_s26 = smov 128   ;;  %s869_s27 = smov 8  }
 0x3d0   :  { %589 = dma.vmem_to_hbm [thread:$0]  %s584_s24, 256, %s1058_s6, [#allocation4], %s868_s26, %s868_s26, %s869_s27  }
 0x3d1   :  { %847 = dma.done.wait [#allocation4], 256  }
 0x3d2   :  { %848 = vsyncadd [#allocation4], 4294967040 }
 0x3d3   :  { %593 = vsyncpa [#allocation3], 1 }
 0x3d4   :  { %594 = vsyncpa [#allocation6], 1 }
 0x3d5   :  { %595 = vsyncpa [#allocation4], 1 }

</bundles_post_ra>
